<compile_context>
chip_gen: v6e
topology: v6e:2x2x1
jax: 0.10.0
libtpu: 0.0.40
codegen_flags: <defaults>
</compile_context>

<pallas_src>
import functools

import jax
import jax.numpy as jnp
from jax.experimental import pallas as pl
from jax.experimental.pallas import tpu as pltpu


def lm_base_output_kernel(x_ref, w_ref, b_ref, res_ref, o_ref, acc_ref):
    """One (m, n, k) grid step of  out = x @ W_t + b + residual.

    x_ref   : (tm, tk)  activation tile
    w_ref   : (tk, tn)  dense weight tile, (in, out) layout
    b_ref   : (1,  tn)  dense bias tile
    res_ref : (tm, tn)  residual (input_tensor) tile
    o_ref   : (tm, tn)  output tile
    acc_ref : (tm, tn)  f32 accumulator scratch (resident across k)
    """
    k = pl.program_id(2)

    @pl.when(k == 0)
    def _():
        acc_ref[...] = jnp.zeros_like(acc_ref)

    acc_ref[...] += jnp.dot(
        x_ref[...], w_ref[...], preferred_element_type=jnp.float32
    )

    @pl.when(k == pl.num_programs(2) - 1)
    def _():
        # TODO(synk): training-mode dropout (config.hidden_dropout_prob) not
        # implemented; eval-mode dropout is the identity.
        out = (
            acc_ref[...]
            + b_ref[...].astype(jnp.float32)
            + res_ref[...].astype(jnp.float32)
        )
        o_ref[...] = out.astype(o_ref.dtype)


# --------------------------------------------------------------------------
# Tile / VMEM budgeting helpers
# --------------------------------------------------------------------------

def _round_up(x, m):
    return (x + m - 1) // m * m


def _vmem_capacity_bytes():
    """Physical VMEM capacity (generation-aware); conservative fallback."""
    try:
        cap = getattr(pltpu.get_tpu_info(), "vmem_capacity_bytes", None)
        if cap:
            return int(cap)
    except Exception:
        pass
    return 64 * 1024 * 1024  # v7x-sized conservative default


def _largest_divisor(dim, candidates):
    for c in candidates:
        if c <= dim and dim % c == 0:
            return c
    return dim


def _tile_footprint_bytes(tm, tn, tk, x_b, w_b, r_b, o_b):
    return (
        2 * tm * tk * x_b      # activations (double-buffered)
        + 2 * tk * tn * w_b    # weight      (double-buffered)
        + 2 * tm * tn * r_b    # residual    (double-buffered)
        + 2 * tn * 4           # bias        (tiny)
        + 2 * tm * tn * o_b    # output      (double-buffered)
        + tm * tn * 4          # f32 accumulator scratch
    )


# --------------------------------------------------------------------------
# Pallas call
# --------------------------------------------------------------------------

@functools.partial(jax.jit, static_argnames=("tm", "tn", "tk", "vmem_limit"))
def _lm_base_output_call(x, res, w, b, *, tm, tn, tk, vmem_limit):
    Mp, I = x.shape
    H = w.shape[0]
    out_dtype = jnp.result_type(x.dtype, res.dtype)

    # One-time layout change to (in, out): the kernel then runs a plain
    # (tm, tk) @ (tk, tn) dot on the MXU with no per-tile transpose.
    w_t = w.T                    # (I, H)
    b2 = b.reshape(1, H)

    grid = (Mp // tm, H // tn, I // tk)

    return pl.pallas_call(
        lm_base_output_kernel,
        out_shape=jax.ShapeDtypeStruct((Mp, H), out_dtype),
        grid_spec=pltpu.PrefetchScalarGridSpec(
            num_scalar_prefetch=0,
            grid=grid,
            in_specs=[
                pl.BlockSpec((tm, tk), lambda m, n, k: (m, k)),   # activations
                pl.BlockSpec((tk, tn), lambda m, n, k: (k, n)),   # weight (in,out)
                pl.BlockSpec((1, tn), lambda m, n, k: (0, n)),    # bias
                pl.BlockSpec((tm, tn), lambda m, n, k: (m, n)),   # residual
            ],
            out_specs=pl.BlockSpec((tm, tn), lambda m, n, k: (m, n)),
            scratch_shapes=[pltpu.VMEM((tm, tn), jnp.float32)],
        ),
        compiler_params=pltpu.CompilerParams(
            dimension_semantics=("parallel", "parallel", "arbitrary"),
            vmem_limit_bytes=int(vmem_limit),
        ),
    )(x, w_t, b2, res)


def lm_base_output(hidden_states, input_tensor, w_dense, b_dense,
                   *, tm=None, tn=None, tk=None):
    """hidden_states: [B, S, I], input_tensor: [B, S, H].

    w_dense: [H, I] (PyTorch (out, in) layout), b_dense: [H].
    Returns [B, S, H] = hidden_states @ w_dense.T + b_dense + input_tensor.
    """
    B, S, I = hidden_states.shape
    H = w_dense.shape[0]
    assert w_dense.shape == (H, I)
    assert input_tensor.shape == (B, S, H)

    M = B * S
    x = hidden_states.reshape(M, I)          # layout-free flatten
    res = input_tensor.reshape(M, H)

    x_b = x.dtype.itemsize
    w_b = w_dense.dtype.itemsize
    r_b = res.dtype.itemsize
    o_b = jnp.result_type(x.dtype, res.dtype).itemsize

    # dtype-aware sublane minimum for the token tile (packed layouts).
    sublane_min = {4: 8, 2: 16, 1: 32}.get(x_b, 8)

    vmem_cap = _vmem_capacity_bytes()
    vmem_budget = max(min(vmem_cap - 12 * 1024 * 1024, 112 * 1024 * 1024),
                      32 * 1024 * 1024)

    # ---- automatic tile selection -------------------------------------
    if tn is None or tk is None:
        if 2 * H * I * w_b <= 8 * 1024 * 1024:
            # Resident-weight fast path: the full weight sits in VMEM and is
            # DMA'd exactly once (constant block index across the grid).
            tn_auto, tk_auto = H, I
        else:
            tn_auto = _largest_divisor(H, (512, 256, 128))
            tk_auto = _largest_divisor(I, (1024, 512, 256, 128))
        tn = tn if tn is not None else tn_auto
        tk = tk if tk is not None else tk_auto

    if tm is None:
        # Larger token tiles raise weight-stream arithmetic intensity; budget
        # against the generation's VMEM capacity.
        tm_target = 1024 if vmem_cap >= 100 * 1024 * 1024 else 512
        tm = min(tm_target, _round_up(M, sublane_min))
        tm = _round_up(tm, sublane_min)
        while (tm > sublane_min
               and _tile_footprint_bytes(tm, tn, tk, x_b, w_b, r_b, o_b)
               > vmem_budget):
            tm = max(sublane_min, _round_up(tm // 2, sublane_min))

    assert H % tn == 0 and I % tk == 0, "tn/tk must divide hidden/intermediate"
    assert tm % sublane_min == 0, "tm must respect the dtype sublane minimum"

    # ---- pad ragged M up to a tile multiple ----------------------------
    Mp = _round_up(M, tm)
    if Mp != M:
        pad = Mp - M
        x = jnp.pad(x, ((0, pad), (0, 0)))
        res = jnp.pad(res, ((0, pad), (0, 0)))

    fp = _tile_footprint_bytes(tm, tn, tk, x_b, w_b, r_b, o_b)
    vmem_limit = min(max(vmem_budget, fp + fp // 4), vmem_cap - 8 * 1024 * 1024)
    vmem_limit = max(int(vmem_limit), 32 * 1024 * 1024)

    out = _lm_base_output_call(x, res, w_dense, b_dense,
                               tm=tm, tn=tn, tk=tk, vmem_limit=vmem_limit)
    return out[:M].reshape(B, S, H)


def _init_linear(key, out_features, in_features):
    """Deterministic PyTorch-style Linear init: U(-1/sqrt(in), 1/sqrt(in))."""
    kw, kb = jax.random.split(key)
    bound = 1.0 / (in_features ** 0.5)
    w = jax.random.uniform(kw, (out_features, in_features), jnp.float32,
                           minval=-bound, maxval=bound)
    b = jax.random.uniform(kb, (out_features,), jnp.float32,
                           minval=-bound, maxval=bound)
    return w, b


if __name__ == "__main__":
    # batch=2, seq=8, intermediate_size=256, hidden_size=128
    B, S, I, H = 2, 8, 256, 128

    key = jax.random.PRNGKey(0)
    k_hs, k_res, k_dense = jax.random.split(key, 3)

    hidden_states = jax.random.normal(k_hs, (B, S, I), jnp.float32)
    input_tensor = jax.random.normal(k_res, (B, S, H), jnp.float32)
    w_dense, b_dense = _init_linear(k_dense, H, I)   # dense: Linear(I, H)

    # Explicit small tiles -> grid (2, 1, 2): exercises accumulator
    # init / accumulate / finalize across the k axis.
    out_tiled = lm_base_output(hidden_states, input_tensor, w_dense, b_dense,
                               tm=8, tn=128, tk=128)
    # Automatic tiling (weight-resident fast path at these sizes).
    out_auto = lm_base_output(hidden_states, input_tensor, w_dense, b_dense)
    out_tiled, out_auto = jax.block_until_ready((out_tiled, out_auto))

    # reference check (plain JAX)
    ref = jnp.einsum("bsi,hi->bsh", hidden_states, w_dense) + b_dense + input_tensor
    assert out_tiled.shape == (B, S, H)
    assert jnp.allclose(out_tiled, ref, atol=1e-4, rtol=1e-4)
    assert jnp.allclose(out_auto, ref, atol=1e-4, rtol=1e-4)

    print("KERNEL_OK")
</pallas_src>

<mosaic_0001>
module attributes {stable_mosaic.version = 11 : i64} {
  func.func @lm_base_output_kernel(%arg0: i32, %arg1: i32, %arg2: i32, %arg3: memref<8x128xf32, #tpu.memory_space<vmem>>, %arg4: memref<128x128xf32, #tpu.memory_space<vmem>>, %arg5: memref<1x128xf32, #tpu.memory_space<vmem>>, %arg6: memref<8x128xf32, #tpu.memory_space<vmem>>, %arg7: memref<8x128xf32, #tpu.memory_space<vmem>>, %arg8: memref<8x128xf32, #tpu.memory_space<vmem>>) attributes {dimension_semantics = [#tpu.dimension_semantics<parallel>, #tpu.dimension_semantics<parallel>, #tpu.dimension_semantics<arbitrary>], iteration_bounds = array<i64: 2, 1, 2>, scalar_prefetch = 0 : i64, scratch_operands = 1 : i64, tpu.core_type = #tpu.core_type<tc>, window_params = [{transform_indices = @transform_0, window_bounds = array<i64: 8, 128>}, {transform_indices = @transform_1, window_bounds = array<i64: 128, 128>}, {transform_indices = @transform_2, window_bounds = array<i64: 1, 128>}, {transform_indices = @transform_3, window_bounds = array<i64: 8, 128>}, {transform_indices = @transform_4, window_bounds = array<i64: 8, 128>}]} {
    %c0_i32 = arith.constant 0 : i32
    %0 = arith.cmpi eq, %arg2, %c0_i32 : i32
    %1 = arith.extui %0 : i1 to i32
    %c0_i32_0 = arith.constant 0 : i32
    %2 = arith.cmpi ne, %1, %c0_i32_0 : i32
    scf.if %2 {
      %cst_9 = arith.constant 0.000000e+00 : f32
      %12 = vector.broadcast %cst_9 : f32 to vector<8x128xf32>
      %c0_10 = arith.constant 0 : index
      %c0_11 = arith.constant 0 : index
      %13 = vector.load %arg8[%c0_10, %c0_11] : memref<8x128xf32, #tpu.memory_space<vmem>>, vector<8x128xf32>
      tpu.vector_store %arg8[%c0_10, %c0_11], %12 {strides = array<i32>} : memref<8x128xf32, #tpu.memory_space<vmem>>, vector<8x128xf32>,
    } else {
    }
    %c0 = arith.constant 0 : index
    %c0_1 = arith.constant 0 : index
    %3 = vector.load %arg8[%c0, %c0_1] : memref<8x128xf32, #tpu.memory_space<vmem>>, vector<8x128xf32>
    %c0_2 = arith.constant 0 : index
    %c0_3 = arith.constant 0 : index
    %4 = vector.load %arg3[%c0_2, %c0_3] : memref<8x128xf32, #tpu.memory_space<vmem>>, vector<8x128xf32>
    %c0_4 = arith.constant 0 : index
    %c0_5 = arith.constant 0 : index
    %5 = vector.load %arg4[%c0_4, %c0_5] : memref<128x128xf32, #tpu.memory_space<vmem>>, vector<128x128xf32>
    %cst = arith.constant dense<0.000000e+00> : vector<8x128xf32>
    %6 = tpu.matmul %4, %5, %cst {dimension_numbers = #tpu.dot_dimension_numbers<[1], [0], [0], [1], [0, 0, 1, 1], [], []>} : vector<8x128xf32>, vector<128x128xf32>, vector<8x128xf32> -> vector<8x128xf32>
    %7 = arith.addf %3, %6 : vector<8x128xf32>
    %c0_6 = arith.constant 0 : index
    %c0_7 = arith.constant 0 : index
    %8 = vector.load %arg8[%c0_6, %c0_7] : memref<8x128xf32, #tpu.memory_space<vmem>>, vector<8x128xf32>
    tpu.vector_store %arg8[%c0_6, %c0_7], %7 {strides = array<i32>} : memref<8x128xf32, #tpu.memory_space<vmem>>, vector<8x128xf32>,
    %c1_i32 = arith.constant 1 : i32
    %9 = arith.cmpi eq, %arg2, %c1_i32 : i32
    %10 = arith.extui %9 : i1 to i32
    %c0_i32_8 = arith.constant 0 : i32
    %11 = arith.cmpi ne, %10, %c0_i32_8 : i32
    scf.if %11 {
      %c0_9 = arith.constant 0 : index
      %c0_10 = arith.constant 0 : index
      %12 = vector.load %arg8[%c0_9, %c0_10] : memref<8x128xf32, #tpu.memory_space<vmem>>, vector<8x128xf32>
      %c0_11 = arith.constant 0 : index
      %c0_12 = arith.constant 0 : index
      %13 = vector.load %arg5[%c0_11, %c0_12] : memref<1x128xf32, #tpu.memory_space<vmem>>, vector<1x128xf32>
      %14 = vector.broadcast %13 : vector<1x128xf32> to vector<8x128xf32>
      %15 = arith.addf %12, %14 : vector<8x128xf32>
      %c0_13 = arith.constant 0 : index
      %c0_14 = arith.constant 0 : index
      %16 = vector.load %arg6[%c0_13, %c0_14] : memref<8x128xf32, #tpu.memory_space<vmem>>, vector<8x128xf32>
      %17 = arith.addf %15, %16 : vector<8x128xf32>
      %c0_15 = arith.constant 0 : index
      %c0_16 = arith.constant 0 : index
      %18 = vector.load %arg7[%c0_15, %c0_16] : memref<8x128xf32, #tpu.memory_space<vmem>>, vector<8x128xf32>
      tpu.vector_store %arg7[%c0_15, %c0_16], %17 {strides = array<i32>} : memref<8x128xf32, #tpu.memory_space<vmem>>, vector<8x128xf32>,
    } else {
    }
    return
  }
  func.func @transform_0(%arg0: i32, %arg1: i32, %arg2: i32) -> (i32, i32) {
    %c0_i32 = arith.constant 0 : i32
    return %arg0, %arg2 : i32, i32
  }
  func.func @transform_1(%arg0: i32, %arg1: i32, %arg2: i32) -> (i32, i32) {
    %c0_i32 = arith.constant 0 : i32
    return %arg2, %arg1 : i32, i32
  }
  func.func @transform_2(%arg0: i32, %arg1: i32, %arg2: i32) -> (i32, i32) {
    %c0_i32 = arith.constant 0 : i32
    %c0_i32_0 = arith.constant 0 : i32
    return %c0_i32, %arg1 : i32, i32
  }
  func.func @transform_3(%arg0: i32, %arg1: i32, %arg2: i32) -> (i32, i32) {
    %c0_i32 = arith.constant 0 : i32
    return %arg0, %arg1 : i32, i32
  }
  func.func @transform_4(%arg0: i32, %arg1: i32, %arg2: i32) -> (i32, i32) {
    %c0_i32 = arith.constant 0 : i32
    return %arg0, %arg1 : i32, i32
  }
}

</mosaic_0001>

<bundles_post_ra>
// kernel: _lm_base_output_call.1
= control target key start
LH: loop header
LB: loop body
LE: loop exit
PB: predicated region body
PF: predicated region fallthrough
CT: control target
= control target key end

     0   :  { %9 = vsyncpa [#allocation4], 0  ;;  %s987_s0 = inlined_call_operand.vmem [shape: f32[16,256], index: 0, kind: input, shape index: {}]   ;;  %s988_s1 = inlined_call_operand.vmem [shape: f32[256,128], index: 1, kind: input, shape index: {}]   ;;  %s989_s2 = inlined_call_operand.vmem [shape: f32[1,128], index: 2, kind: input, shape index: {}]   ;;  %s990_s3 = inlined_call_operand.vmem [shape: f32[16,128], index: 3, kind: input, shape index: {}]   ;;  %s991_s4 = inlined_call_operand.hbm [shape: f32[16,128], index: 4, kind: output, shape index: {}]  }
   0x1   :  { %11 = vsyncpa [#allocation4 + $0x1], 0  ;;  %s819_s15 = smov 0   ;;  %s821_s16 = smov 0  }
   0x2   :  { %s823_s17 = smov 0   ;;  %s825_s18 = smov 0  }
   0x3   :  { %s827_s19 = smov 0   ;;  %s829_s20 = smov 0  }
   0x4   :  { %s831_s21 = smov 0   ;;  %s833_s22 = smov 0  }
   0x5 LB: > { %996 = sst [smem:[#allocation6_spill]] %s780_s20  ;;  %s551_s23 = sadd.s32 4294967295, %s788_s22   ;;  %s788_s22 = sphi %s833_s22, %s17_s22   ;;  %s784_s21 = sphi %s831_s21, %s1012_s21   ;;  %s780_s20 = sphi %s829_s20, %s1007_s20   ;;  %s776_s19 = sphi %s827_s19, %s1006_s19   ;;  %s772_s18 = sphi %s825_s18, %s1005_s18   ;;  %s768_s17 = sphi %s823_s17, %s1011_s17   ;;  %s764_s16 = sphi %s821_s16, %s1010_s16   ;;  %s760_s15 = sphi %s819_s15, %s1009_s15  }
   0x6   : > { %997 = sst [smem:[#allocation7_spill]] %s784_s21  ;;  %s552_s24 = sadd.s32 4294967294, %s788_s22  }
   0x7   : > { %s29_s25 = sadd.s32 1, %s780_s20  ;;  %s36_s26 = sadd.s32 1, %s784_s21 }
   0x8   : > { %p30_p0 = scmp.ge.s32.totalorder %s29_s25, 2  ;;  %p165_p1 = scmp.ne.s32.totalorder %s768_s17, %s764_s16 }
   0x9   : > { %p166_p2 = scmp.eq.s32.totalorder %s551_s23, 3  ;;  %p171_p4 = scmp.ne.s32.totalorder %s764_s16, %s760_s15 }
   0xa   : > { %s1014_s25 = smov (%p30_p0, %s29_s25), 0  ;;  %s1016_s26 = smov (!%p30_p0, %s36_s26), %s784_s21 }
   0xb   : > { %998 = sst [smem:[#allocation8_spill]] %s1014_s25  ;;  %p868_p3 = por %p166_p2, %p165_p1 }
   0xc   : > { %p38_p5 = scmp.ge.s32.totalorder %s1016_s26, 2  ;;  %p172_p6 = scmp.eq.s32.totalorder %s552_s24, 3 }
   0xd   : > { %p556_p7 = scmp.ge.s32.totalorder %s788_s22, 1  ;;  %p229_p8 = scmp.lt.s32.totalorder %s788_s22, 5 }
   0xe   : > { %s1018_s26 = smov (%p38_p5, %s1016_s26), 0  ;;  %p878_p9 = por %p172_p6, %p171_p4 }
   0xf   : > { %1000 = sst [smem:[#allocation9_spill]] %s1018_s26  ;;  %p230_p10 = pnand %p556_p7, %p229_p8 }
  0x10   : > { %s150_s29 = ssub.s32 %s784_s21, %s1018_s26  ;;  %s155_s30 = sadd.s32 1, %s768_s17 }
  0x11   : > { %p153_p11 = scmp.eq.s32.totalorder %s150_s29, 0  ;;  %233 = sbr.rel (%p230_p10) target bundleno = 303 (0x12f), region = 36 }
  0x12   : > { %s993_s6 = sand.u32 (!%p230_p10), 1, %s764_s16   ;;  %p276_p12 = scmp.lt.s32.totalorder (!%p230_p10), %s776_s19, 1 }
  0x13   : > { %s886_s5 = scalar_select %p153_p11, %s768_s17, %s155_s30  }
  0x14   : > { %s892_s7 = sshll.u32 (!%p230_p10), %s993_s6, 3  ;;  %p278_p13 = scmp.lt.s32.totalorder (!%p230_p10), %s772_s18, 1 }
  0x15   : > { %1002 = sst [smem:[#allocation10_spill]] %s886_s5  ;;  %s560_s8 = sshll.u32 (!%p230_p10), %s772_s18, 4 }
  0x16   : > { %s277_s9 = scalar_select %p276_p12, %s776_s19, 1 }
  0x17   : > { %s279_s10 = scalar_select %p278_p13, %s772_s18, 1 }
  0x18   : > { %s558_s11 = sshll.u32 %s277_s9, 1  ;;  %p285_p0 = scmp.lt.s32.totalorder %s560_s8, 31 }
  0x19   : > { %s281_s12 = sadd.s32 %s558_s11, %s279_s10  ;;  %s562_s13 = sshll.u32 %s277_s9, 3 }
  0x1a   : > { %s559_s14 = sshll.u32 %s281_s12, 3  ;;  %s901_s29 = scalar_lea.vmem %s990_s3, %s562_s13 }
  0x1b   : > { %s906_s6 = scalar_lea.vmem %s987_s0, %s559_s14  ;;  %s1020_s8 = smov (!%p285_p0, %s560_s8), 31 }
  0x1c   : > { %s561_s25 = sshll.u32 %s1020_s8, 3  ;;  %s275_s10 = scalar_lea.vmem [#allocation3], %s892_s7 }
  0x1d   : > { %s911_s5 = scalar_lea.vmem %s988_s1, %s561_s25  ;;  %p563_p1 = scmp.ne.s32.totalorder %s772_s18, 0 }
  0x1f   : > { %306 = sbr.rel (%p563_p1) target bundleno = 38 (0x26), region = 40 }
  0x24   : > { %v790_v0 = vmov 0.0  }
  0x25   : > { %307 = vst [vmem:[#allocation2] sm:$0xff] %v790_v0 }
  0x26 PF: > { %v325_v1 = vld [vmem:[%s911_s5 + $0x78] sm:$0xff]  ;;  %v791_v2 = vmov 0.0   ;;  %v324_v3 = vld [vmem:[%s911_s5 + $0x70] sm:$0xff]  ;;  %vm792_vm0 = vmmov 0   ;;  %v323_v4 = vld [vmem:[%s911_s5 + $0x68] sm:$0xff]  ;;  %p564_p2 = scmp.ne.s32.totalorder %s772_s18, 1 }
  0x27   : > { %587 = vmatprep.subr.mxu0 %v791_v2  ;;  %619 = vmatprep.mubr.msk.f32.mxu0 %vm792_vm0, %v791_v2  ;;  %v322_v5 = vld [vmem:[%s911_s5 + $0x60] sm:$0xff]  ;;  %v321_v6 = vld [vmem:[%s911_s5 + $0x58] sm:$0xff]  ;;  %v320_v7 = vld [vmem:[%s911_s5 + $0x50] sm:$0xff] }
  0x28   : > { %588 = vmatpush3.msra.mxu0 %v325_v1  ;;  %v319_v8 = vld [vmem:[%s911_s5 + $0x48] sm:$0xff]  ;;  %v318_v9 = vld [vmem:[%s911_s5 + $0x40] sm:$0xff]  ;;  %v317_v10 = vld [vmem:[%s911_s5 + $0x38] sm:$0xff] }
  0x29   : > { %589 = vmatprep.subr.mxu0 %v791_v2  ;;  %v316_v11 = vld [vmem:[%s911_s5 + $0x30] sm:$0xff]  ;;  %v315_v12 = vld [vmem:[%s911_s5 + $0x28] sm:$0xff]  ;;  %v314_v13 = vld [vmem:[%s911_s5 + $0x20] sm:$0xff] }
  0x2a   : > { %590 = vmatpush3.msra.mxu0 %v324_v3  ;;  %v313_v14 = vld [vmem:[%s911_s5 + $0x18] sm:$0xff]  ;;  %v312_v15 = vld [vmem:[%s911_s5 + $0x10] sm:$0xff]  ;;  %v311_v16 = vld [vmem:[%s911_s5 + $0x8] sm:$0xff] }
  0x2b   : > { %591 = vmatprep.subr.mxu0 %v791_v2  ;;  %v310_v17 = vld [vmem:[%s911_s5] sm:$0xff] }
  0x2c   : > { %592 = vmatpush3.msra.mxu0 %v323_v4  ;;  %v309_v18 = vld [vmem:[%s906_s6] sm:$0xff] }
  0x2d   : > { %593 = vmatprep.subr.mxu0 %v791_v2  ;;  %v308_v19 = vld [vmem:[#allocation2] sm:$0xff] }
  0x2e   : > { %594 = vmatpush3.msra.mxu0 %v322_v5 }
  0x2f   : > { %595 = vmatprep.subr.mxu0 %v791_v2 }
  0x30   : > { %596 = vmatpush3.msra.mxu0 %v321_v6 }
  0x31   : > { %597 = vmatprep.subr.mxu0 %v791_v2 }
  0x32   : > { %598 = vmatpush3.msra.mxu0 %v320_v7 }
  0x33   : > { %599 = vmatprep.subr.mxu0 %v791_v2 }
  0x34   : > { %600 = vmatpush3.msra.mxu0 %v319_v8 }
  0x35   : > { %601 = vmatprep.subr.mxu0 %v791_v2 }
  0x36   : > { %602 = vmatpush3.msra.mxu0 %v318_v9 }
  0x37   : > { %603 = vmatprep.subr.mxu0 %v791_v2 }
  0x38   : > { %604 = vmatpush3.msra.mxu0 %v317_v10 }
  0x39   : > { %605 = vmatprep.subr.mxu0 %v791_v2 }
  0x3a   : > { %606 = vmatpush3.msra.mxu0 %v316_v11 }
  0x3b   : > { %607 = vmatprep.subr.mxu0 %v791_v2 }
  0x3c   : > { %608 = vmatpush3.msra.mxu0 %v315_v12 }
  0x3d   : > { %609 = vmatprep.subr.mxu0 %v791_v2 }
  0x3e   : > { %610 = vmatpush3.msra.mxu0 %v314_v13 }
  0x3f   : > { %611 = vmatprep.subr.mxu0 %v791_v2 }
  0x40   : > { %612 = vmatpush3.msra.mxu0 %v313_v14 }
  0x41   : > { %613 = vmatprep.subr.mxu0 %v791_v2 }
  0x42   : > { %614 = vmatpush3.msra.mxu0 %v312_v15 }
  0x43   : > { %615 = vmatprep.subr.mxu0 %v791_v2 }
  0x44   : > { %616 = vmatpush3.msra.mxu0 %v311_v16 }
  0x45   : > { %617 = vmatprep.subr.mxu0 %v791_v2 }
  0x46   : > { %618 = vmatpush3.msra.mxu0 %v310_v17 }
  0x47   : > { %620 = vmatmul.mubr.f32.vlgmr.msra.gmra.mxu0 %v309_v18 }
 0x106   : > { %401 = sbr.rel (%p564_p2) target bundleno = 279 (0x117), region = 44 }
 0x107   : > { %v392_v20 = vpop.f32.mrf.mxu0 }
 0x108   : > { %v396_v21 = vadd.f32 %v392_v20, %v308_v19 }
 0x109   : > { %v621_v22 = vpop.f32.mrf.mxu0 }
 0x10a   : > { %397 = vst [vmem:[#allocation2] sm:$0xff] %v396_v21 }
 0x10b   : > { %v565_v24 = vld [vmem:[%s989_s2] ss:$0 sm:$0xff] }
 0x10c   : > { %v411_v25 = vld [vmem:[%s901_s29] sm:$0xff] }
 0x111   : > { %v402_v23 = vld [vmem:[#allocation2] sm:$0xff] }
 0x112   : > { %v410_v26 = vadd.f32 %v565_v24, %v402_v23 }
 0x114   : > { %v412_v27 = vadd.f32 %v411_v25, %v410_v26 }
 0x116   : > { %413 = vst [vmem:[%s275_s10] sm:$0xff] %v412_v27 }
 0x117 PF: > { %s567_s25 = sshll.u32 %s776_s19, 7  ;;  %s429_s6 = sshll.u32 %s275_s10, 4  ;;  %s430_s6 = int_to_ptr.vmem [resolvable:$true] %s429_s6 }
 0x118   : > { %s427_s5 = scalar_lea.hbm %s991_s4, %s567_s25  ;;  %s1003_s8 = sand.u32 1, %s764_s16  }
 0x119   : > { %s415_s9 = scalar_lea.sflag [#allocation4], %s1003_s8  ;;  %s696_s11 = scalar_lea.vmem %s430_s6, 128 }
 0x11a   : > { %p697_p4 = scmp.ne.s32.totalorder %s430_s6, %s696_s11  ;;  %s793_s12 = smov [#allocation3]  }
 0x11b   : > { %s700_s13 = sshll.u32 %s793_s12, 4  ;;  %s701_s13 = int_to_ptr.vmem [resolvable:$false] %s700_s13 }
 0x11c   : > { %p698_p5 = pnand %p697_p4, %p868_p3  ;;  %s702_s14 = scalar_lea.vmem %s701_s13, 256 }
 0x11d   : > { %p703_p7 = scmp.lt.s32.totalorder %s430_s6, %s701_s13  ;;  %p704_p8 = scmp.lt.s32.totalorder %s702_s14, %s696_s11 }
 0x11e   : > { %p699_p6 = pneg %p698_p5 }
 0x11f   : > { %p705_p10 = por %p704_p8, %p703_p7 }
 0x121   : > { %p706_p11 = pnand %p705_p10, %p699_p6 }
 0x123   : > { %709 = shalt.err (!%p706_p11)
}
 0x124   : > { %s710_s19 = scalar_lea.hbm %s427_s5, 128  ;;  %s714_s24 = scalar_lea.hbm %s991_s4, 256 }
 0x125   : > { %p711_p12 = scmp.ne.s32.totalorder %s427_s5, %s710_s19  ;;  %p715_p1 = scmp.lt.s32.totalorder %s427_s5, %s991_s4 }
 0x126   : > { %p716_p2 = scmp.lt.s32.totalorder %s714_s24, %s710_s19 }
 0x127   : > { %p712_p13 = pnand %p711_p12, %p868_p3 }
 0x128   : > { %p717_p4 = por %p716_p2, %p715_p1 }
 0x129   : > { %p713_p0 = pneg %p712_p13 }
 0x12b   : > { %p718_p5 = pnand %p717_p4, %p713_p0 }
 0x12d   : > { %721 = shalt.err (!%p718_p5)
}
 0x12e   : > { %622 = dma.vmem_to_hbm [thread:$0]  (%p868_p3), %s430_s6, 128, %s427_s5, %s415_s9  }
 0x12f PF: > { %p628_p6 = scmp.ge.s32.totalorder %s788_s22, 2  ;;  %s441_s10 = sand.u32 1, %s760_s15  }
 0x130   : > { %s442_s20 = scalar_lea.sflag [#allocation4], %s441_s10 }
 0x131   : > { %p625_p7 = pnand %p628_p6, %p878_p9 }
 0x133   : > { %p626_p8 = pneg %p625_p7 }
 0x135   : > { %755 = dma.done.wait (%p626_p8), %s442_s20, 128  }
 0x136   : > { %757 = vsyncadd (%p626_p8), %s442_s20, 4294967168  ;;  %s17_s22 = sadd.s32 1, %s788_s22   ;;  %s1004_s21 = sld [smem:[#allocation10_spill]] }
 0x137   : > { %p14_p10 = scmp.ge.s32.totalorder %s17_s22, 6   ;;  %s1005_s18 = sld [smem:[#allocation6_spill]] }
 0x138   : > { %s1006_s19 = sld [smem:[#allocation7_spill]]  ;;  %s1009_s15 = smov %s764_s16 }
 0x139   : > { %s1007_s20 = sld [smem:[#allocation8_spill]]  ;;  %s1010_s16 = smov %s768_s17 }
 0x13a   : > { %s1008_s27 = sld [smem:[#allocation9_spill]] }
 0x13c   : > { %s1011_s17 = smov %s1004_s21  ;;  %16 = sbr.rel (!%p14_p10) target bundleno = 5 (0x5), region = 88 }
 0x140   : > { %s1012_s21 = smov %s1008_s27 }
 0x141   :  { %447 = vsyncpa [#allocation4], 1 }
 0x142   :  { %449 = vsyncpa [#allocation4 + $0x1], 1 }

</bundles_post_ra>
